<compile_context>
chip_gen: v7x
topology: tpu7x:2x2x1
jax: 0.10.0
libtpu: 0.0.40
codegen_flags: <defaults>
</compile_context>

<pallas_src>
import functools
import math
import numpy as np
import jax
import jax.numpy as jnp
from jax.experimental import pallas as pl
from jax.experimental.pallas import tpu as pltpu


def _ceil_to(x, m):
    return ((x + m - 1) // m) * m


def _vmem_limit_bytes():
    # 3/4 of physical VMEM, capped at 96 MiB:
    #   v5e/v6e (128 MiB physical) -> 96 MiB ;  v7x (64 MiB) -> 48 MiB.
    # Fallback when the query is unavailable: 48 MiB (safe on every gen).
    try:
        cap = int(pltpu.get_tpu_info().vmem_capacity_bytes)
        return int(min(96 * 1024 * 1024, (cap * 3) // 4))
    except Exception:
        return 48 * 1024 * 1024


def _pad2d(x, rows, cols, dtype):
    x = x.astype(dtype)
    pr, pc = rows - x.shape[0], cols - x.shape[1]
    if pr or pc:
        x = jnp.pad(x, ((0, pr), (0, pc)))
    return x


# ----------------------------- Pallas kernels ------------------------------

def _src_transform_kernel(h_ref, qw_ref, qb_ref, w1_ref, m_ref, *, ones_col):
    # m_src = relu(h_src @ Qw + Qb) @ Ww1   (bf16 matmuls, f32 intermediate).
    # Column `ones_col` (inside the 128-lane padding) is set to 1.0 so kernel 2
    # gets ws = A @ ones for free on the MXU.
    n = jnp.dot(h_ref[...], qw_ref[...], preferred_element_type=jnp.float32)
    n = jnp.maximum(n + qb_ref[...], 0.0)                        # f32 relu
    m = jnp.dot(n.astype(jnp.bfloat16), w1_ref[...],
                preferred_element_type=jnp.float32)
    lane = jax.lax.broadcasted_iota(jnp.int32, m.shape, 1)
    m = jnp.where(lane == ones_col, 1.0, m)
    m_ref[...] = m.astype(m_ref.dtype)                           # bf16 out


def _dst_aggregate_kernel(a_ref, m_ref, hdst_ref, w2_ref, wb_ref, z_ref,
                          acc_ref, *, m_resident, tile_k, ws_col):
    # k-tiled reduction over src nodes:  acc += A_tile @ [m | 1]_tile
    # finalize: ws = clamp(acc[:, ws_col], 1)
    #           z  = relu(acc * (1/ws) + h_dst @ Ww2 + Wb)
    k = pl.program_id(1)

    @pl.when(k == 0)
    def _():
        acc_ref[...] = jnp.zeros_like(acc_ref)

    if m_resident:
        # m_src is fully resident in VMEM; slice the current k chunk.
        off = pl.multiple_of(k * tile_k, tile_k)
        m = m_ref[pl.ds(off, tile_k), :]
    else:
        m = m_ref[...]
    acc_ref[...] += jnp.dot(a_ref[...], m, preferred_element_type=jnp.float32)

    @pl.when(k == pl.num_programs(1) - 1)
    def _():
        acc = acc_ref[...]
        ws = jnp.maximum(acc[:, ws_col:ws_col + 1], 1.0)         # clamp(min=1)
        inv = pl.reciprocal(ws, approx=True)                     # EUP slot
        z = (acc * inv
             + jnp.dot(hdst_ref[...], w2_ref[...],
                       preferred_element_type=jnp.float32)
             + wb_ref[...])
        z_ref[...] = jnp.maximum(z, 0.0).astype(z_ref.dtype)


# ------------------------------ Host wrapper -------------------------------

def weighted_sage_conv(A, h_src, h_dst, Qw, Qb, Ww1, Ww2, Wb,
                       *, tile_src=512, tile_dst=512, tile_k=1024):
    N_src, D_in = h_src.shape
    N_dst = h_dst.shape[0]
    H = Qw.shape[1]
    D_out = Ww1.shape[1]
    Qb = Qb.reshape(1, -1)
    Wb = Wb.reshape(1, -1)

    vmem_limit = _vmem_limit_bytes()

    # ---- lane-dense padded feature dims (multiples of 128) ----
    D_in_p = _ceil_to(D_in, 128)
    H_p = _ceil_to(H, 128)
    D_out_p = _ceil_to(D_out + 1, 128)   # +1 -> extra "ones" column carries ws
    ws_col = D_out

    # ---- tile selection: %128 lanes, %16 sublanes, clean divisibility ----
    N_src_128 = _ceil_to(max(N_src, 1), 128)
    tile_src = _ceil_to(min(tile_src, N_src_128), 128)
    tile_k = _ceil_to(min(tile_k, N_src_128), 128)
    tile_k = max(tile_src, (tile_k // tile_src) * tile_src)  # tile_src | tile_k
    N_src_p = _ceil_to(N_src, tile_k)

    # >=2 dst blocks when possible so v7x's two TensorCores both get work.
    half_dst = _ceil_to(max(-(-N_dst // 2), 16), 16)
    tile_dst = max(16, _ceil_to(min(tile_dst, half_dst), 16))
    N_dst_p = _ceil_to(N_dst, tile_dst)

    # ---- cast + pad (bf16 for MXU; zero A columns keep padded src inert) ----
    bf = jnp.bfloat16
    A_p = _pad2d(A, N_dst_p, N_src_p, bf)
    hs_p = _pad2d(h_src, N_src_p, D_in_p, bf)
    hd_p = _pad2d(h_dst, N_dst_p, D_in_p, bf)
    Qw_p = _pad2d(Qw, D_in_p, H_p, bf)
    Qb_p = _pad2d(Qb, 1, H_p, jnp.float32)
    Ww1_p = _pad2d(Ww1, H_p, D_out_p, bf)
    Ww2_p = _pad2d(Ww2, D_in_p, D_out_p, bf)
    Wb_p = _pad2d(Wb, 1, D_out_p, jnp.float32)

    # ---- kernel 1: src linear + relu + folded W1 (+ ones column) ----
    m_src = pl.pallas_call(
        functools.partial(_src_transform_kernel, ones_col=ws_col),
        out_shape=jax.ShapeDtypeStruct((N_src_p, D_out_p), jnp.bfloat16),
        grid_spec=pltpu.PrefetchScalarGridSpec(
            num_scalar_prefetch=0,
            grid=(N_src_p // tile_src,),
            in_specs=[
                pl.BlockSpec((tile_src, D_in_p), lambda i: (i, 0)),
                pl.BlockSpec((D_in_p, H_p), lambda i: (0, 0)),
                pl.BlockSpec((1, H_p), lambda i: (0, 0)),
                pl.BlockSpec((H_p, D_out_p), lambda i: (0, 0)),
            ],
            out_specs=pl.BlockSpec((tile_src, D_out_p), lambda i: (i, 0)),
        ),
        compiler_params=pltpu.CompilerParams(
            dimension_semantics=("parallel",),
            vmem_limit_bytes=vmem_limit),
    )(hs_p, Qw_p, Qb_p, Ww1_p)

    # ---- kernel 2: k-tiled weighted aggregation + dst linear + relu ----
    m_bytes = N_src_p * D_out_p * 2
    # Keep m_src resident (DMA'd once) when 2x its size (double-buffer worst
    # case) still leaves at least half the VMEM budget for A / h_dst / acc / z.
    m_resident = (2 * m_bytes) <= (vmem_limit // 2)
    if m_resident:
        m_spec = pl.BlockSpec((N_src_p, D_out_p), lambda i, k: (0, 0))
    else:
        m_spec = pl.BlockSpec((tile_k, D_out_p), lambda i, k: (k, 0))

    n_dst_blocks = N_dst_p // tile_dst
    cost = pl.CostEstimate(
        flops=2 * N_dst_p * N_src_p * D_out_p + 2 * N_dst_p * D_in_p * D_out_p,
        transcendentals=N_dst_p,
        bytes_accessed=(N_dst_p * N_src_p * 2                       # A
                        + (1 if m_resident else n_dst_blocks) * m_bytes
                        + N_dst_p * D_in_p * 2                      # h_dst
                        + N_dst_p * D_out_p * 4),                   # z
    )

    z_p = pl.pallas_call(
        functools.partial(_dst_aggregate_kernel, m_resident=m_resident,
                          tile_k=tile_k, ws_col=ws_col),
        out_shape=jax.ShapeDtypeStruct((N_dst_p, D_out_p), jnp.float32),
        grid_spec=pltpu.PrefetchScalarGridSpec(
            num_scalar_prefetch=0,
            grid=(n_dst_blocks, N_src_p // tile_k),
            in_specs=[
                pl.BlockSpec((tile_dst, tile_k), lambda i, k: (i, k)),
                m_spec,
                pl.BlockSpec((tile_dst, D_in_p), lambda i, k: (i, 0)),
                pl.BlockSpec((D_in_p, D_out_p), lambda i, k: (0, 0)),
                pl.BlockSpec((1, D_out_p), lambda i, k: (0, 0)),
            ],
            out_specs=pl.BlockSpec((tile_dst, D_out_p), lambda i, k: (i, 0)),
            scratch_shapes=[
                pltpu.VMEM((tile_dst, D_out_p), jnp.float32),  # agg|ws accum
            ],
        ),
        compiler_params=pltpu.CompilerParams(
            dimension_semantics=("parallel", "arbitrary"),
            vmem_limit_bytes=vmem_limit),
        cost_estimate=cost,
    )(A_p, m_src, hd_p, Ww2_p, Wb_p)

    return z_p[:N_dst, :D_out]


# ------------------------------- Init / demo -------------------------------

def xavier_uniform(key, shape, fan_in, fan_out, gain):
    a = gain * math.sqrt(6.0 / (fan_in + fan_out))
    return jax.random.uniform(key, shape, jnp.float32, -a, a)


if __name__ == "__main__":
    # Small, deliberately non-tile-aligned shapes (exercise padding + cdiv).
    N_SRC, N_DST = 320, 120
    D_IN, HID, D_OUT = 16, 32, 32

    key = jax.random.PRNGKey(0)
    k_hs, k_hd, k_w, k_mask, k_q, k_ww = jax.random.split(key, 6)

    h_src = jax.random.normal(k_hs, (N_SRC, D_IN), jnp.float32)
    h_dst = jax.random.normal(k_hd, (N_DST, D_IN), jnp.float32)

    # Dense bipartite edge-weight matrix (~30% edges, positive weights).
    w_vals = jax.random.uniform(k_w, (N_DST, N_SRC), jnp.float32, 0.1, 2.0)
    mask = (jax.random.uniform(k_mask, (N_DST, N_SRC)) < 0.3).astype(jnp.float32)
    A = w_vals * mask

    gain = math.sqrt(2.0)  # nn.init.calculate_gain('relu')
    # Q: Linear(D_IN, HID) -> stored transposed [D_IN, HID].
    Qw = xavier_uniform(k_q, (D_IN, HID), fan_in=D_IN, fan_out=HID, gain=gain)
    Qb = jnp.zeros((1, HID), jnp.float32)
    # W: Linear(D_IN + HID, D_OUT) -> stored transposed & split to match
    # torch.cat([n/ws, h_dst], 1): rows [:HID] -> agg/ws, rows [HID:] -> h_dst.
    Wt = xavier_uniform(k_ww, (HID + D_IN, D_OUT),
                        fan_in=HID + D_IN, fan_out=D_OUT, gain=gain)
    Ww1, Ww2 = Wt[:HID], Wt[HID:]
    Wb = jnp.zeros((1, D_OUT), jnp.float32)

    # Small tiles in the demo so the k-tiled accumulator and row padding paths
    # are exercised; defaults are the large perf-tuned tiles for real sizes.
    z = weighted_sage_conv(A, h_src, h_dst, Qw, Qb, Ww1, Ww2, Wb,
                           tile_src=128, tile_dst=64, tile_k=128)
    z = jax.block_until_ready(z)

    # Pure-JAX reference (original, un-folded formula) on bf16-rounded inputs.
    # NOTE: the kernel folds Ww1 before aggregation and stores m_src in bf16,
    # so rounding order differs from fp32 torch; compare at loose tolerance.
    def bfr(x):
        return x.astype(jnp.bfloat16).astype(jnp.float32)

    n_ref = jnp.maximum(bfr(h_src) @ bfr(Qw) + Qb, 0.0)
    agg_ref = bfr(A) @ n_ref
    ws_ref = jnp.maximum(jnp.sum(bfr(A), axis=1, keepdims=True), 1.0)
    z_ref = jnp.maximum(
        jnp.concatenate([agg_ref / ws_ref, bfr(h_dst)], axis=1)
        @ jnp.concatenate([bfr(Ww1), bfr(Ww2)], axis=0) + Wb, 0.0)

    np.testing.assert_allclose(np.asarray(z), np.asarray(z_ref),
                               rtol=5e-2, atol=5e-2)
    print("KERNEL_OK")
</pallas_src>

<mosaic_0001>
module attributes {stable_mosaic.version = 11 : i64} {
  func.func @_src_transform_kernel(%arg0: i32, %arg1: memref<128x128xbf16, #tpu.memory_space<vmem>>, %arg2: memref<128x128xbf16, #tpu.memory_space<vmem>>, %arg3: memref<1x128xf32, #tpu.memory_space<vmem>>, %arg4: memref<128x128xbf16, #tpu.memory_space<vmem>>, %arg5: memref<128x128xbf16, #tpu.memory_space<vmem>>) attributes {dimension_semantics = [#tpu.dimension_semantics<parallel>], iteration_bounds = array<i64: 3>, scalar_prefetch = 0 : i64, scratch_operands = 0 : i64, tpu.core_type = #tpu.core_type<tc>, window_params = [{transform_indices = @transform_0, window_bounds = array<i64: 128, 128>}, {pipeline_mode = #tpu.pipeline_mode<synchronous>, transform_indices = @transform_1, window_bounds = array<i64: 128, 128>}, {pipeline_mode = #tpu.pipeline_mode<synchronous>, transform_indices = @transform_2, window_bounds = array<i64: 1, 128>}, {pipeline_mode = #tpu.pipeline_mode<synchronous>, transform_indices = @transform_3, window_bounds = array<i64: 128, 128>}, {transform_indices = @transform_4, window_bounds = array<i64: 128, 128>}]} {
    %c0 = arith.constant 0 : index
    %c0_0 = arith.constant 0 : index
    %0 = vector.load %arg1[%c0, %c0_0] : memref<128x128xbf16, #tpu.memory_space<vmem>>, vector<128x128xbf16>
    %c0_1 = arith.constant 0 : index
    %c0_2 = arith.constant 0 : index
    %1 = vector.load %arg2[%c0_1, %c0_2] : memref<128x128xbf16, #tpu.memory_space<vmem>>, vector<128x128xbf16>
    %cst = arith.constant dense<0.000000e+00> : vector<128x128xf32>
    %2 = tpu.matmul %0, %1, %cst {dimension_numbers = #tpu.dot_dimension_numbers<[1], [0], [0], [1], [0, 0, 1, 1], [], []>} : vector<128x128xbf16>, vector<128x128xbf16>, vector<128x128xf32> -> vector<128x128xf32>
    %c0_3 = arith.constant 0 : index
    %c0_4 = arith.constant 0 : index
    %3 = vector.load %arg3[%c0_3, %c0_4] : memref<1x128xf32, #tpu.memory_space<vmem>>, vector<1x128xf32>
    %4 = vector.broadcast %3 : vector<1x128xf32> to vector<128x128xf32>
    %5 = arith.addf %2, %4 : vector<128x128xf32>
    %cst_5 = arith.constant 0.000000e+00 : f32
    %6 = vector.broadcast %cst_5 : f32 to vector<128x128xf32>
    %7 = arith.maximumf %5, %6 : vector<128x128xf32>
    %8 = arith.truncf %7 : vector<128x128xf32> to vector<128x128xbf16>
    %c0_6 = arith.constant 0 : index
    %c0_7 = arith.constant 0 : index
    %9 = vector.load %arg4[%c0_6, %c0_7] : memref<128x128xbf16, #tpu.memory_space<vmem>>, vector<128x128xbf16>
    %cst_8 = arith.constant dense<0.000000e+00> : vector<128x128xf32>
    %10 = tpu.matmul %8, %9, %cst_8 {dimension_numbers = #tpu.dot_dimension_numbers<[1], [0], [0], [1], [0, 0, 1, 1], [], []>} : vector<128x128xbf16>, vector<128x128xbf16>, vector<128x128xf32> -> vector<128x128xf32>
    %11 = tpu.iota {dimensions = array<i32: 1>} : vector<128x128xi32>
    %c32_i32 = arith.constant 32 : i32
    %12 = vector.broadcast %c32_i32 : i32 to vector<128x128xi32>
    %13 = arith.cmpi eq, %11, %12 : vector<128x128xi32>
    %cst_9 = arith.constant 1.000000e+00 : f32
    %14 = vector.broadcast %cst_9 : f32 to vector<128x128xf32>
    %15 = arith.select %13, %14, %10 : vector<128x128xi1>, vector<128x128xf32>
    %16 = arith.truncf %15 : vector<128x128xf32> to vector<128x128xbf16>
    %c0_10 = arith.constant 0 : index
    %c0_11 = arith.constant 0 : index
    %17 = vector.load %arg5[%c0_10, %c0_11] : memref<128x128xbf16, #tpu.memory_space<vmem>>, vector<128x128xbf16>
    tpu.vector_store %arg5[%c0_10, %c0_11], %16 {strides = array<i32>} : memref<128x128xbf16, #tpu.memory_space<vmem>>, vector<128x128xbf16>,
    return
  }
  func.func @transform_0(%arg0: i32) -> (i32, i32) {
    %c0_i32 = arith.constant 0 : i32
    %c0_i32_0 = arith.constant 0 : i32
    return %arg0, %c0_i32 : i32, i32
  }
  func.func @transform_1(%arg0: i32) -> (i32, i32) {
    %c0_i32 = arith.constant 0 : i32
    %c0_i32_0 = arith.constant 0 : i32
    %c0_i32_1 = arith.constant 0 : i32
    return %c0_i32, %c0_i32_0 : i32, i32
  }
  func.func @transform_2(%arg0: i32) -> (i32, i32) {
    %c0_i32 = arith.constant 0 : i32
    %c0_i32_0 = arith.constant 0 : i32
    %c0_i32_1 = arith.constant 0 : i32
    return %c0_i32, %c0_i32_0 : i32, i32
  }
  func.func @transform_3(%arg0: i32) -> (i32, i32) {
    %c0_i32 = arith.constant 0 : i32
    %c0_i32_0 = arith.constant 0 : i32
    %c0_i32_1 = arith.constant 0 : i32
    return %c0_i32, %c0_i32_0 : i32, i32
  }
  func.func @transform_4(%arg0: i32) -> (i32, i32) {
    %c0_i32 = arith.constant 0 : i32
    %c0_i32_0 = arith.constant 0 : i32
    return %arg0, %c0_i32 : i32, i32
  }
}

</mosaic_0001>

<bundles_post_ra>
// kernel: tpu_custom_call.1
= control target key start
LH: loop header
LB: loop body
LE: loop exit
PB: predicated region body
PF: predicated region fallthrough
CT: control target
= control target key end

     0   :  { %9 = vsyncpa [#allocation3], 0  ;;  %s1654_s0 = inlined_call_operand.hbm [shape: bf16[384,128], index: 0, kind: input, shape index: {}]   ;;  %s1655_s1 = inlined_call_operand.hbm [shape: bf16[128,128], index: 1, kind: input, shape index: {}]   ;;  %s1656_s2 = inlined_call_operand.vmem [shape: f32[1,128], index: 2, kind: input, shape index: {}]   ;;  %s1657_s3 = inlined_call_operand.hbm [shape: bf16[128,128], index: 3, kind: input, shape index: {}]   ;;  %s1658_s4 = inlined_call_operand.hbm [shape: bf16[384,128], index: 4, kind: output, shape index: {}]  }
   0x1   :  { %11 = vsyncpa [#allocation3 + $0x1], 0 }
   0x2   :  { %12 = vsyncpa [#allocation6], 0 }
   0x3   :  { %13 = vsyncpa [#allocation4], 0 }
   0x4   :  { %15 = vsyncpa [#allocation4 + $0x1], 0  ;;  %s1376_s15 = smov 0   ;;  %s1378_s16 = smov 0  }
   0x5   :  { %s1380_s17 = smov 0   ;;  %s1382_s18 = smov 0  }
   0x6 LB: > { %s1397_s19 = sadd.s32 4294967295, %s1341_s18   ;;  %s870_s20 = sadd.s32 4294967294, %s1341_s18   ;;  %s1341_s18 = sphi %s1382_s18, %s1677_s18   ;;  %s1337_s17 = sphi %s1380_s17, %s1676_s17   ;;  %s1333_s16 = sphi %s1378_s16, %s1675_s16   ;;  %s1329_s15 = sphi %s1376_s15, %s1674_s15  }
   0x7   : > { %p41_p0 = scmp.ne.s32.totalorder %s1333_s16, %s1329_s15  ;;  %p1659_p1 = scmp.eq.s32.totalorder %s1397_s19, 0 }
   0x8   : > { %p134_p3 = scmp.eq.s32.totalorder %s870_s20, 2  ;;  %p871_p5 = scmp.ge.s32.totalorder %s1341_s18, 1 }
   0x9   : > { %p1406_p4 = por %p1659_p1, %p41_p0  ;;  %p141_p7 = scmp.lt.s32.totalorder %s1341_s18, 4 }
   0xa   : > { %p1411_p6 = por %p134_p3, %p41_p0  ;;  %s1343_s24 = smov [#allocation5]  }
   0xb   : > { %s1662_s21 = scalar_select %p1406_p4, 1, 0 }
   0xc   : > { %s1663_s22 = scalar_select %p1411_p6, 1, 0 }
   0xd   : > { %p1416_p8 = pnand %p871_p5, %p141_p7  ;;  %s153_s25 = sshll.u32 %s1343_s24, 4  ;;  %s154_s25 = int_to_ptr.vmem [resolvable:$true] %s153_s25 }
   0xe   : > { %s1344_s27 = smov [#allocation7]   ;;  %s1185_s5 = scalar_lea.hbm %s1655_s1, 1024 }
   0xf   : > { %s1664_s23 = scalar_select %p1416_p8, 1, 0 }
  0x10   : > { %p1102_p9 = pneg %p1416_p8  ;;  %s169_s28 = sshll.u32 %s1344_s27, 4  ;;  %s1428_s28 = int_to_ptr.vmem [resolvable:$true] %s169_s28 }
  0x11   : > { %p1186_p11 = scmp.ne.s32.totalorder %s1655_s1, %s1185_s5  ;;  %p1192_p3 = scmp.lt.u32.totalorder %s1185_s5, %s1655_s1 }
  0x12   : > { %p1424_p10 = pnand %p1102_p9, %p1659_p1 }
  0x14   : > { %p1187_p12 = pneg %p1424_p10 }
  0x16   : > { %p1188_p13 = pnand %p1187_p12, %p1186_p11 }
  0x18   : > { %p1189_p0 = pneg %p1188_p13 }
  0x1a   : > { %p1194_p5 = pnand %p1192_p3, %p1189_p0 }
  0x1c   : > { %1197 = shalt.err (!%p1194_p5)
}
  0x1d   : > { %s1198_s10 = scalar_lea.vmem %s154_s25, 1024  ;;  %p1206_p2 = scmp.lt.s32.totalorder %s154_s25, %s154_s25 }
  0x1e   : > { %p1199_p7 = scmp.ne.s32.totalorder %s154_s25, %s1198_s10  ;;  %p1207_p6 = scmp.lt.s32.totalorder %s1198_s10, %s1198_s10 }
  0x20   : > { %p1201_p9 = pnand %p1199_p7, %p1187_p12  ;;  %p1208_p4 = por %p1207_p6, %p1206_p2 }
  0x22   : > { %p1202_p1 = pneg %p1201_p9 }
  0x24   : > { %p1209_p8 = pnand %p1208_p4, %p1202_p1 }
  0x26   : > { %1212 = shalt.err (!%p1209_p8)
}
  0x27   : > { %s1345_s11 = smov 64   ;;  %s1346_s12 = smov 4  }
  0x28   : > { %1105 = dma.hbm_to_vmem [thread:$0]  (!%p1424_p10), %s1655_s1, 1024, %s154_s25, [#allocation6], %s1345_s11, %s1345_s11, %s1346_s12  }
  0x29   : > { %s1213_s27 = scalar_lea.hbm %s1657_s3, 1024 }
  0x2a   : > { %p1214_p1 = scmp.ne.s32.totalorder %s1657_s3, %s1213_s27  ;;  %p1220_p6 = scmp.lt.u32.totalorder %s1213_s27, %s1657_s3 }
  0x2c   : > { %p1216_p2 = pnand %p1214_p1, %p1187_p12 }
  0x2e   : > { %p1217_p4 = pneg %p1216_p2 }
  0x30   : > { %p1222_p8 = pnand %p1220_p6, %p1217_p4 }
  0x32   : > { %1225 = shalt.err (!%p1222_p8)
}
  0x33   : > { %s1226_s25 = scalar_lea.vmem %s1428_s28, 1024  ;;  %p1234_p3 = scmp.lt.s32.totalorder %s1428_s28, %s1428_s28 }
  0x34   : > { %p1227_p11 = scmp.ne.s32.totalorder %s1428_s28, %s1226_s25  ;;  %p1235_p5 = scmp.lt.s32.totalorder %s1226_s25, %s1226_s25 }
  0x36   : > { %p1229_p13 = pnand %p1227_p11, %p1187_p12  ;;  %p1236_p7 = por %p1235_p5, %p1234_p3 }
  0x38   : > { %p1230_p0 = pneg %p1229_p13 }
  0x3a   : > { %p1237_p9 = pnand %p1236_p7, %p1230_p0 }
  0x3c   : > { %1240 = shalt.err (!%p1237_p9)
}
  0x3d   : > { %1108 = dma.hbm_to_vmem [thread:$0]  (!%p1424_p10), %s1657_s3, 1024, %s1428_s28, [#allocation6], %s1345_s11, %s1345_s11, %s1346_s12  }
  0x3e   : > { %s1484_s26 = sadd.s32 1, %s1341_s18   ;;  %s28_s9 = sadd.s32 1, %s1337_s17 }
  0x3f   : > { %s25_s10 = ssub.s32 %s1341_s18, %s1484_s26  ;;  %p35_p12 = scmp.ne.s32.totalorder %s1337_s17, %s1333_s16 }
  0x40   : > { %p26_p1 = scmp.eq.s32.totalorder %s25_s10, 0  ;;  %p36_p2 = scmp.eq.s32.totalorder %s1341_s18, 0 }
  0x41   : > { %p1666_p4 = scmp.eq.s32.totalorder %s1397_s19, 2  ;;  %p1119_p8 = scmp.lt.s32.totalorder %s1341_s18, 3 }
  0x42   : > { %s1500_s14 = scalar_select %p26_p1, %s1337_s17, %s28_s9  }
  0x43   : > { %p1494_p6 = por %p1666_p4, %p35_p12  ;;  %p37_p11 = por %p36_p2, %p35_p12 }
  0x44   : > { %s183_s20 = sand.u32 1, %s1337_s17   ;;  %s929_s28 = sshll.u32 %s1341_s18, 10 }
  0x45   : > { %s875_s24 = sshll.u32 %s183_s20, 6  ;;  %s1507_s30 = scalar_lea.hbm %s1654_s0, %s929_s28 }
  0x46   : > { %s187_s5 = scalar_lea.vmem [#allocation2], %s875_s24  ;;  %p1511_p10 = pnand %p1119_p8, %p37_p11 }
  0x47   : > { %s194_s6 = sshll.u32 %s187_s5, 4  ;;  %s1515_s7 = scalar_lea.sflag [#allocation3], %s183_s20  ;;  %s1509_s6 = int_to_ptr.vmem [resolvable:$true] %s194_s6 }
  0x48   : > { %s1241_s8 = scalar_lea.hbm %s1507_s30, 1024  ;;  %p1243_p0 = pneg %p1511_p10 }
  0x49   : > { %p1242_p13 = scmp.ne.s32.totalorder %s1507_s30, %s1241_s8  ;;  %s1246_s24 = scalar_lea.hbm %s1654_s0, 3072 }
  0x4a   : > { %p1247_p7 = scmp.lt.u32.totalorder %s1507_s30, %s1654_s0  ;;  %p1248_p9 = scmp.lt.u32.totalorder %s1246_s24, %s1241_s8 }
  0x4b   : > { %p1244_p3 = pnand %p1243_p0, %p1242_p13  ;;  %p1250_p1 = scmp.lt.u32.totalorder %s1241_s8, %s1507_s30 }
  0x4c   : > { %p1249_p12 = por %p1248_p9, %p1247_p7 }
  0x4d   : > { %p1245_p5 = pneg %p1244_p3 }
  0x4e   : > { %p1251_p2 = por %p1250_p1, %p1249_p12 }
  0x50   : > { %p1252_p4 = pnand %p1251_p2, %p1245_p5 }
  0x52   : > { %1255 = shalt.err (!%p1252_p4)
}
  0x53   : > { %s1256_s20 = scalar_lea.vmem %s1509_s6, 1024  ;;  %s1347_s29 = smov [#allocation2]  }
  0x54   : > { %p1257_p8 = scmp.ne.s32.totalorder %s1509_s6, %s1256_s20  ;;  %s1261_s5 = sshll.u32 %s1347_s29, 4  ;;  %s1262_s5 = int_to_ptr.vmem [resolvable:$false] %s1261_s5 }
  0x55   : > { %s1263_s9 = scalar_lea.vmem %s1262_s5, 2048  ;;  %p1264_p3 = scmp.lt.s32.totalorder %s1509_s6, %s1262_s5 }
  0x56   : > { %p1259_p11 = pnand %p1257_p8, %p1243_p0  ;;  %p1265_p7 = scmp.lt.s32.totalorder %s1263_s9, %s1256_s20 }
  0x58   : > { %p1260_p13 = pneg %p1259_p11  ;;  %p1266_p9 = por %p1265_p7, %p1264_p3 }
  0x5a   : > { %p1267_p12 = pnand %p1266_p9, %p1260_p13 }
  0x5c   : > { %1270 = shalt.err (!%p1267_p12)
}
  0x5d   : > { %1112 = dma.hbm_to_vmem [thread:$0]  (!%p1511_p10), %s1507_s30, 1024, %s1509_s6, %s1515_s7, %s1345_s11, %s1345_s11, %s1346_s12  }
  0x5e   : > { %p1669_p0 = scmp.ne.s32.totalorder %s1664_s23, 0 }
  0x5f   : > { %s1549_s8 = sand.u32 (!%p1669_p0), 1, %s1333_s16   ;;  %p1670_p5 = scmp.ne.s32.totalorder (!%p1669_p0), %s1662_s21, 0 }
  0x60   : > { %206 = sbr.rel (%p1669_p0) target bundleno = 619 (0x26b), region = 36  ;;  %s879_s10 = sshll.u32 (!%p1669_p0), %s1549_s8, 6 }
  0x61   : > { %s209_s24 = scalar_lea.sflag (!%p1669_p0), [#allocation3], %s1549_s8  ;;  %s1555_s25 = scalar_lea.vmem (!%p1669_p0), [#allocation2], %s879_s10 }
  0x67   : > { %1316 = dma.done.wait (%p1670_p5), %s209_s24, 1024  }
  0x68   : > { %1318 = vsyncadd (%p1670_p5), %s209_s24, 4294966272  ;;  %p1671_p10 = scmp.eq.s32.totalorder %s1397_s19, 0 }
  0x6a   : > { %1320 = dma.done.wait (%p1671_p10), [#allocation6], 2048   ;;  %p1672_p1 = pmov %p1671_p10 }
  0x6b   : > { %v1161_v0 = vld [vmem:[#allocation5] sm:$0xff]   ;;  %v1162_v1 = vld [vmem:[#allocation5 + $0x8] sm:$0xff]   ;;  %v1163_v2 = vld [vmem:[#allocation5 + $0x10] sm:$0xff]   ;;  %s1582_s11 = scalar_lea.vmem [#allocation8], %s879_s10  ;;  %s946_s30 = sshll.u32 %s1397_s19, 10 }
  0x6c   : > { %1322 = vsyncadd (%p1672_p1), [#allocation6], 4294965248  ;;  %1026 = vmatprep.subr.bf16.mxu0 %v1161_v0  ;;  %v1164_v3 = vld [vmem:[#allocation5 + $0x18] sm:$0xff]   ;;  %v1169_v4 = vld [vmem:[%s1555_s25] sm:$0xff]   ;;  %s778_s12 = sshll.u32 %s1582_s11, 4  ;;  %s1609_s19 = scalar_lea.hbm %s1658_s4, %s946_s30  ;;  %s1600_s12 = int_to_ptr.vmem [resolvable:$true] %s778_s12 }
  0x6d   : > { %1027 = vmatpush3.bf16.msra.mxu0 %v1161_v0  ;;  %1042 = vmatprep.mubr.bf16.mxu0 %v1169_v4  ;;  %v1165_v5 = vld [vmem:[#allocation5 + $0x20] sm:$0xff]   ;;  %v1166_v6 = vld [vmem:[#allocation5 + $0x28] sm:$0xff]   ;;  %v1167_v9 = vld [vmem:[#allocation5 + $0x30] sm:$0xff]   ;;  %s765_s28 = scalar_lea.sflag [#allocation4], %s1549_s8  ;;  %s1271_s27 = scalar_lea.vmem %s1600_s12, 1024 }
  0x6e   : > { %1028 = vmatprep.subr.bf16.mxu0 %v1162_v1  ;;  %v1177_v7 = vld [vmem:[#allocation7] sm:$0xff]   ;;  %v1178_v8 = vld [vmem:[#allocation7 + $0x8] sm:$0xff]   ;;  %v1179_v10 = vld [vmem:[#allocation7 + $0x10] sm:$0xff]   ;;  %p1272_p2 = scmp.ne.s32.totalorder %s1600_s12, %s1271_s27  ;;  %s1348_s20 = smov [#allocation8]  }
  0x6f   : > { %1058 = vmatprep.subr.bf16.mxu1 %v1177_v7  ;;  %v1168_v11 = vld [vmem:[#allocation5 + $0x38] sm:$0xff]   ;;  %v1181_v13 = vld [vmem:[#allocation7 + $0x20] sm:$0xff]   ;;  %v1170_v14 = vld [vmem:[%s1555_s25 + $0x8] sm:$0xff]   ;;  %s1275_s29 = sshll.u32 %s1348_s20, 4  ;;  %s1276_s29 = int_to_ptr.vmem [resolvable:$false] %s1275_s29 }
  0x70   : > { %1059 = vmatpush3.bf16.msra.mxu1 %v1177_v7  ;;  %v1180_v12 = vld [vmem:[#allocation7 + $0x18] sm:$0xff]   ;;  %v1171_v15 = vld [vmem:[%s1555_s25 + $0x10] sm:$0xff]   ;;  %v1182_v16 = vld [vmem:[#allocation7 + $0x28] sm:$0xff]   ;;  %p1273_p4 = pnand %p1272_p2, %p1494_p6  ;;  %s1277_s5 = scalar_lea.vmem %s1276_s29, 2048 }
  0x71   : > { %1029 = vmatpush3.bf16.msra.mxu0 %v1162_v1  ;;  %1060 = vmatprep.subr.bf16.mxu1 %v1178_v8  ;;  %v1172_v17 = vld [vmem:[%s1555_s25 + $0x18] sm:$0xff]   ;;  %v1173_v18 = vld [vmem:[%s1555_s25 + $0x20] sm:$0xff]   ;;  %v1174_v19 = vld [vmem:[%s1555_s25 + $0x28] sm:$0xff]   ;;  %p1278_p11 = scmp.lt.s32.totalorder %s1600_s12, %s1276_s29  ;;  %p1279_p13 = scmp.lt.s32.totalorder %s1277_s5, %s1271_s27 }
  0x72   : > { %1030 = vmatprep.subr.bf16.mxu0 %v1163_v2  ;;  %v1175_v20 = vld [vmem:[%s1555_s25 + $0x30] sm:$0xff]   ;;  %v1176_v21 = vld [vmem:[%s1555_s25 + $0x38] sm:$0xff]   ;;  %v883_v24 = vld [vmem:[%s1656_s2] ss:$0 sm:$0xff]  ;;  %p1274_p8 = pneg %p1273_p4 }
  0x73   : > { %v1183_v22 = vld [vmem:[#allocation7 + $0x30] sm:$0xff]   ;;  %v1184_v23 = vld [vmem:[#allocation7 + $0x38] sm:$0xff]   ;;  %p1280_p3 = por %p1279_p13, %p1278_p11 }
  0x74   : > { %1061 = vmatpush3.bf16.msra.mxu1 %v1178_v8 }
  0x75   : > { %1031 = vmatpush3.bf16.msra.mxu0 %v1163_v2  ;;  %1062 = vmatprep.subr.bf16.mxu1 %v1179_v10  ;;  %p1281_p7 = pnand %p1280_p3, %p1274_p8 }
  0x76   : > { %1032 = vmatprep.subr.bf16.mxu0 %v1164_v3 }
  0x78   : > { %1063 = vmatpush3.bf16.msra.mxu1 %v1179_v10 }
  0x79   : > { %1033 = vmatpush3.bf16.msra.mxu0 %v1164_v3  ;;  %1064 = vmatprep.subr.bf16.mxu1 %v1180_v12 }
  0x7a   : > { %1034 = vmatprep.subr.bf16.mxu0 %v1165_v5 }
  0x7c   : > { %1065 = vmatpush3.bf16.msra.mxu1 %v1180_v12 }
  0x7d   : > { %1035 = vmatpush3.bf16.msra.mxu0 %v1165_v5  ;;  %1066 = vmatprep.subr.bf16.mxu1 %v1181_v13 }
  0x7e   : > { %1036 = vmatprep.subr.bf16.mxu0 %v1166_v6 }
  0x80   : > { %1067 = vmatpush3.bf16.msra.mxu1 %v1181_v13 }
  0x81   : > { %1037 = vmatpush3.bf16.msra.mxu0 %v1166_v6  ;;  %1068 = vmatprep.subr.bf16.mxu1 %v1182_v16 }
  0x82   : > { %1038 = vmatprep.subr.bf16.mxu0 %v1167_v9 }
  0x84   : > { %1069 = vmatpush3.bf16.msra.mxu1 %v1182_v16 }
  0x85   : > { %1039 = vmatpush3.bf16.msra.mxu0 %v1167_v9  ;;  %1070 = vmatprep.subr.bf16.mxu1 %v1183_v22 }
  0x86   : > { %1040 = vmatprep.subr.bf16.mxu0 %v1168_v11 }
  0x88   : > { %1071 = vmatpush3.bf16.msra.mxu1 %v1183_v22 }
  0x89   : > { %1041 = vmatpush3.bf16.msra.mxu0 %v1168_v11  ;;  %1072 = vmatprep.subr.bf16.mxu1 %v1184_v23 }
  0x8c   : > { %1043 = vmatmul.mubr.bf16.vlgmr.msra.gmra.mrb[0].mxu0 %v1170_v14  ;;  %1073 = vmatpush3.bf16.msra.mxu1 %v1184_v23 }
  0x8d   : > { %1046 = vmatprep.mubr.bf16.mxu0 %v1171_v15 }
  0x94   : > { %1047 = vmatmul.mubr.bf16.gmra.mrb[4].mxu0 %v1172_v17  ;;  %v665_v17 = vlaneseq }
  0x95   : > { %1050 = vmatprep.mubr.bf16.mxu0 %v1173_v18 }
  0x96   : > { %v666_v18 = vand.u32 127, %v665_v17 }
  0x98   : > { %vm667_vm0 = vcmp.eq.s32.totalorder %v666_v18, 32 }
  0x9c   : > { %1051 = vmatmul.mubr.bf16.gmra.mrb[8].mxu0 %v1174_v19 }
  0x9d   : > { %1054 = vmatprep.mubr.bf16.mxu0 %v1175_v20 }
  0xa4   : > { %1055 = vmatmul.mubr.bf16.gmra.mrb[12].mxu0 %v1176_v21 }
 0x15f   : > { %v1044_v25 = vpop.f32.mrb[0].mxu0 }
 0x160   : > { %v426_v26 = vadd.f32 %v1044_v25, %v883_v24  ;;  %v417_v27 = vpop.f32.mrb[1].mxu0 }
 0x161   : > { %v418_v28 = vadd.f32 %v883_v24, %v417_v27  ;;  %v1045_v29 = vpop.f32.mrb[2].mxu0 }
 0x162   : > { %v429_v30 = vadd.f32 %v1045_v29, %v883_v24  ;;  %v420_v31 = vpop.f32.mrb[3].mxu0  ;;  %v482_v33 = vmax.f32 %v426_v26, 0.0 }
 0x163   : > { %v421_v32 = vadd.f32 %v883_v24, %v420_v31  ;;  %v480_v35 = vmax.f32 %v418_v28, 0.0 }
 0x164   : > { %v483_v34 = vmax.f32 %v429_v30, 0.0 }
 0x165   : > { %v481_v36 = vmax.f32 %v421_v32, 0.0 }
 0x166   : > { %v497_v37 = vpack.c.bf16 %v483_v34, %v482_v33 }
 0x167   : > { %v1048_v38 = vpop.f32.mrb[4].mxu0  ;;  %v496_v39 = vpack.c.bf16 %v481_v36, %v480_v35 }
 0x168   : > { %v442_v40 = vadd.f32 %v1048_v38, %v883_v24  ;;  %v433_v41 = vpop.f32.mrb[5].mxu0 }
 0x169   : > { %v434_v42 = vadd.f32 %v883_v24, %v433_v41  ;;  %v1049_v43 = vpop.f32.mrb[6].mxu0  ;;  %1074 = vmatprep.mubr.bf16.mxu1 %v496_v39 }
 0x16a   : > { %v445_v44 = vadd.f32 %v1049_v43, %v883_v24  ;;  %v436_v45 = vpop.f32.mrb[7].mxu0  ;;  %1075 = vmatmul.mubr.bf16.vlgmr.msra.gmra.mrb[0].mxu1 %v497_v37  ;;  %v486_v47 = vmax.f32 %v442_v40, 0.0 }
 0x16b   : > { %v437_v46 = vadd.f32 %v883_v24, %v436_v45  ;;  %v484_v49 = vmax.f32 %v434_v42, 0.0 }
 0x16c   : > { %v487_v48 = vmax.f32 %v445_v44, 0.0 }
 0x16d   : > { %v485_v50 = vmax.f32 %v437_v46, 0.0 }
 0x16e   : > { %v499_v51 = vpack.c.bf16 %v487_v48, %v486_v47 }
 0x16f   : > { %v498_v52 = vpack.c.bf16 %v485_v50, %v484_v49  ;;  %v1052_v53 = vpop.f32.mrb[8].mxu0 }
 0x170   : > { %v458_v54 = vadd.f32 %v1052_v53, %v883_v24  ;;  %v449_v55 = vpop.f32.mrb[9].mxu0 }
 0x171   : > { %v450_v56 = vadd.f32 %v883_v24, %v449_v55  ;;  %v1053_v57 = vpop.f32.mrb[10].mxu0  ;;  %1078 = vmatprep.mubr.bf16.mxu1 %v498_v52 }
 0x172   : > { %v461_v58 = vadd.f32 %v1053_v57, %v883_v24  ;;  %v452_v59 = vpop.f32.mrb[11].mxu0  ;;  %1079 = vmatmul.mubr.bf16.gmra.mrb[4].mxu1 %v499_v51  ;;  %v490_v61 = vmax.f32 %v458_v54, 0.0 }
 0x173   : > { %v453_v60 = vadd.f32 %v883_v24, %v452_v59  ;;  %v488_v63 = vmax.f32 %v450_v56, 0.0 }
 0x174   : > { %v491_v62 = vmax.f32 %v461_v58, 0.0 }
 0x175   : > { %v489_v0 = vmax.f32 %v453_v60, 0.0 }
 0x176   : > { %v501_v1 = vpack.c.bf16 %v491_v62, %v490_v61 }
 0x177   : > { %v500_v2 = vpack.c.bf16 %v489_v0, %v488_v63  ;;  %v1056_v3 = vpop.f32.mrb[12].mxu0 }
 0x178   : > { %v474_v4 = vadd.f32 %v1056_v3, %v883_v24  ;;  %v465_v5 = vpop.f32.mrb[13].mxu0 }
 0x179   : > { %v466_v6 = vadd.f32 %v883_v24, %v465_v5  ;;  %v1057_v7 = vpop.f32.mrb[14].mxu0  ;;  %1082 = vmatprep.mubr.bf16.mxu1 %v500_v2 }
 0x17a   : > { %v477_v8 = vadd.f32 %v1057_v7, %v883_v24  ;;  %v468_v9 = vpop.f32.mrb[15].mxu0  ;;  %1083 = vmatmul.mubr.bf16.gmra.mrb[8].mxu1 %v501_v1  ;;  %v494_v11 = vmax.f32 %v474_v4, 0.0 }
 0x17b   : > { %v469_v10 = vadd.f32 %v883_v24, %v468_v9  ;;  %v492_v13 = vmax.f32 %v466_v6, 0.0 }
 0x17c   : > { %v495_v12 = vmax.f32 %v477_v8, 0.0 }
 0x17d   : > { %v493_v14 = vmax.f32 %v469_v10, 0.0 }
 0x17e   : > { %v503_v15 = vpack.c.bf16 %v495_v12, %v494_v11 }
 0x17f   : > { %v502_v16 = vpack.c.bf16 %v493_v14, %v492_v13 }
 0x181   : > { %1086 = vmatprep.mubr.bf16.mxu1 %v502_v16 }
 0x182   : > { %1087 = vmatmul.mubr.bf16.gmra.mrb[12].mxu1 %v503_v15 }
 0x23d   : > { %v1076_v19 = vpop.f32.mrb[0].mxu1 }
 0x23e   : > { %v602_v20 = vpop.f32.mrb[1].mxu1  ;;  %v670_v22 = vsel %vm667_vm0, 1.0, %v1076_v19 }
 0x23f   : > { %v1077_v21 = vpop.f32.mrb[2].mxu1  ;;  %v668_v25 = vsel %vm667_vm0, 1.0, %v602_v20 }
 0x240   : > { %v671_v23 = vsel %vm667_vm0, 1.0, %v1077_v21  ;;  %v605_v24 = vpop.f32.mrb[3].mxu1 }
 0x241   : > { %v955_v26 = vpack.c.bf16 %v671_v23, %v670_v22  ;;  %v669_v27 = vsel %vm667_vm0, 1.0, %v605_v24 }
 0x242   : > { %v950_v28 = vpack.c.bf16 %v669_v27, %v668_v25 }
 0x243   : > { %987 = vst [vmem:[%s1582_s11 + $0x8] sm:$0xff] %v955_v26  }
 0x244   : > { %951 = vst [vmem:[%s1582_s11] sm:$0xff] %v950_v28  }
 0x245   : > { %v1080_v29 = vpop.f32.mrb[4].mxu1 }
 0x246   : > { %v618_v30 = vpop.f32.mrb[5].mxu1  ;;  %v674_v32 = vsel %vm667_vm0, 1.0, %v1080_v29 }
 0x247   : > { %v1081_v31 = vpop.f32.mrb[6].mxu1  ;;  %v672_v35 = vsel %vm667_vm0, 1.0, %v618_v30 }
 0x248   : > { %v675_v33 = vsel %vm667_vm0, 1.0, %v1081_v31  ;;  %v621_v34 = vpop.f32.mrb[7].mxu1 }
 0x249   : > { %v965_v36 = vpack.c.bf16 %v675_v33, %v674_v32  ;;  %v673_v37 = vsel %vm667_vm0, 1.0, %v621_v34 }
 0x24a   : > { %v960_v38 = vpack.c.bf16 %v673_v37, %v672_v35 }
 0x24b   : > { %989 = vst [vmem:[%s1582_s11 + $0x18] sm:$0xff] %v965_v36  }
 0x24c   : > { %988 = vst [vmem:[%s1582_s11 + $0x10] sm:$0xff] %v960_v38  }
 0x24d   : > { %v1084_v39 = vpop.f32.mrb[8].mxu1 }
 0x24e   : > { %v634_v40 = vpop.f32.mrb[9].mxu1  ;;  %v678_v42 = vsel %vm667_vm0, 1.0, %v1084_v39 }
 0x24f   : > { %v1085_v41 = vpop.f32.mrb[10].mxu1  ;;  %v676_v45 = vsel %vm667_vm0, 1.0, %v634_v40 }
 0x250   : > { %v679_v43 = vsel %vm667_vm0, 1.0, %v1085_v41  ;;  %v637_v44 = vpop.f32.mrb[11].mxu1 }
 0x251   : > { %v975_v46 = vpack.c.bf16 %v679_v43, %v678_v42  ;;  %v677_v47 = vsel %vm667_vm0, 1.0, %v637_v44 }
 0x252   : > { %v970_v48 = vpack.c.bf16 %v677_v47, %v676_v45 }
 0x253   : > { %991 = vst [vmem:[%s1582_s11 + $0x28] sm:$0xff] %v975_v46  }
 0x254   : > { %990 = vst [vmem:[%s1582_s11 + $0x20] sm:$0xff] %v970_v48  }
 0x255   : > { %v1088_v49 = vpop.f32.mrb[12].mxu1 }
 0x256   : > { %v650_v50 = vpop.f32.mrb[13].mxu1  ;;  %v682_v52 = vsel %vm667_vm0, 1.0, %v1088_v49 }
 0x257   : > { %v1089_v51 = vpop.f32.mrb[14].mxu1  ;;  %v680_v55 = vsel %vm667_vm0, 1.0, %v650_v50 }
 0x258   : > { %v683_v53 = vsel %vm667_vm0, 1.0, %v1089_v51  ;;  %v653_v54 = vpop.f32.mrb[15].mxu1 }
 0x259   : > { %v985_v56 = vpack.c.bf16 %v683_v53, %v682_v52  ;;  %v681_v57 = vsel %vm667_vm0, 1.0, %v653_v54 }
 0x25a   : > { %v980_v58 = vpack.c.bf16 %v681_v57, %v680_v55 }
 0x25b   : > { %993 = vst [vmem:[%s1582_s11 + $0x38] sm:$0xff] %v985_v56  }
 0x25c   : > { %992 = vst [vmem:[%s1582_s11 + $0x30] sm:$0xff] %v980_v58  }
 0x25d   : > { %1284 = shalt.err (!%p1281_p7)
}
 0x25e   : > { %s1285_s9 = scalar_lea.hbm %s1609_s19, 1024  ;;  %s1289_s25 = scalar_lea.hbm %s1658_s4, 3072 }
 0x25f   : > { %p1286_p9 = scmp.ne.s32.totalorder %s1609_s19, %s1285_s9  ;;  %p1290_p5 = scmp.lt.u32.totalorder %s1609_s19, %s1658_s4 }
 0x260   : > { %p1291_p10 = scmp.lt.u32.totalorder %s1289_s25, %s1285_s9  ;;  %p1293_p2 = scmp.lt.u32.totalorder %s1285_s9, %s1609_s19 }
 0x261   : > { %p1287_p12 = pnand %p1286_p9, %p1494_p6 }
 0x262   : > { %p1292_p1 = por %p1291_p10, %p1290_p5 }
 0x263   : > { %p1288_p0 = pneg %p1287_p12 }
 0x264   : > { %p1294_p4 = por %p1293_p2, %p1292_p1 }
 0x266   : > { %p1295_p8 = pnand %p1294_p4, %p1288_p0 }
 0x268   : > { %1298 = shalt.err (!%p1295_p8)
}
 0x269   : > { %s1349_s11 = smov 64   ;;  %s1350_s30 = smov 4  }
 0x26a   : > { %1100 = dma.vmem_to_hbm [thread:$0]  (%p1494_p6), %s1600_s12, 1024, %s1609_s19, %s765_s28, %s1349_s11, %s1349_s11, %s1350_s30  }
 0x26b PF: > { %p1122_p11 = scmp.ge.s32.totalorder %s1341_s18, 2  ;;  %s793_s6 = sand.u32 1, %s1329_s15  }
 0x26c   : > { %p1673_p13 = scmp.ne.s32.totalorder %s1663_s22, 0  ;;  %s794_s7 = scalar_lea.sflag [#allocation4], %s793_s6 }
 0x26e   : > { %p1114_p3 = pnand %p1122_p11, %p1673_p13 }
 0x270   : > { %1324 = dma.done.wait (!%p1114_p3), %s794_s7, 1024  }
 0x271   : > { %1326 = vsyncadd (!%p1114_p3), %s794_s7, 4294966272  ;;  %p18_p7 = scmp.ge.s32.totalorder %s1484_s26, 5   ;;  %s1674_s15 = smov %s1333_s16 }
 0x272   : > { %s1675_s16 = smov %s1337_s17  ;;  %s1676_s17 = smov %s1500_s14 }
 0x273   : > { %s1677_s18 = smov %s1484_s26  ;;  %20 = sbr.rel (!%p18_p7) target bundleno = 6 (0x6), region = 89 }
 0x27a   :  { %799 = vsyncpa [#allocation3], 1 }
 0x27b   :  { %801 = vsyncpa [#allocation3 + $0x1], 1 }
 0x27c   :  { %802 = vsyncpa [#allocation6], 1 }
 0x27d   :  { %803 = vsyncpa [#allocation4], 1 }
 0x27e   :  { %805 = vsyncpa [#allocation4 + $0x1], 1 }

</bundles_post_ra>
